<compile_context>
chip_gen: v7x
topology: tpu7x:2x2x1
jax: 0.10.0
libtpu: 0.0.40
codegen_flags: <defaults>
</compile_context>

<pallas_src>
import math

import jax
import jax.numpy as jnp
from jax.experimental import pallas as pl
from jax.experimental.pallas import tpu as pltpu


# =============================================================================
# (A) Prompt assembly: out = concat([prefix, broadcast(ctx), suffix], axis=1)
# =============================================================================
def _normalize_block_cls(block_cls, n_cls):
    """Clamp and 8-align the class block (sublane alignment for the 2-D prefix block)."""
    block_cls = int(min(block_cls, n_cls))
    if block_cls < n_cls:
        block_cls = max(8, (block_cls // 8) * 8)
    return max(1, min(block_cls, n_cls))


def _choose_block_cls(n_cls, n_ctx, suffix_len, ctx_dim, dtype,
                      vmem_budget_bytes=12 * 1024 * 1024):
    """Classes per grid step for the copy path (double-buffered in+out blocks)."""
    seq_len = 1 + n_ctx + suffix_len
    itemsize = jnp.dtype(dtype).itemsize
    bytes_per_cls = 2 * (1 + suffix_len + seq_len) * ctx_dim * itemsize
    b = int(max(1, vmem_budget_bytes // max(bytes_per_cls, 1)))
    b = min(b, 64, n_cls)
    return _normalize_block_cls(b, n_cls)


def make_prompt_assembly_call(n_cls, n_ctx, suffix_len, ctx_dim, dtype, block_cls):
    """Copy-based assembly (original PromptLearner API), native dtype, 3-region stores."""
    seq_len = 1 + n_ctx + suffix_len
    grid = (pl.cdiv(n_cls, block_cls),)

    def kernel(prefix_ref, ctx_ref, suffix_ref, out_ref):
        # prefix_ref : (block_cls, ctx_dim)            sublane-dense (no padded seq=1 dim)
        # ctx_ref    : (n_ctx, ctx_dim)                whole, VMEM-resident
        # suffix_ref : (block_cls, suffix_len, ctx_dim)
        # out_ref    : (block_cls, seq_len, ctx_dim)
        b = out_ref.shape[0]
        # Three region stores in the NATIVE dtype (no f32 round trip, no concat temp).
        out_ref[:, 0, :] = prefix_ref[...]
        out_ref[:, 1:1 + n_ctx, :] = jnp.broadcast_to(
            ctx_ref[...][None, :, :], (b, n_ctx, ctx_dim))
        out_ref[:, 1 + n_ctx:, :] = suffix_ref[...]

    itemsize = jnp.dtype(dtype).itemsize
    # Double-buffered prefix+suffix+out blocks + the resident ctx.
    block_bytes = (2 * block_cls * (1 + suffix_len + seq_len) * ctx_dim
                   + n_ctx * ctx_dim) * itemsize
    # v5e's scoped-VMEM default is 16 MiB (v6e/v7x: 32 MiB); raise only if needed.
    vmem_limit = 32 * 1024 * 1024 if block_bytes > 12 * 1024 * 1024 else None

    return pl.pallas_call(
        kernel,
        out_shape=jax.ShapeDtypeStruct((n_cls, seq_len, ctx_dim), dtype),
        grid_spec=pltpu.PrefetchScalarGridSpec(
            num_scalar_prefetch=0,
            grid=grid,
            in_specs=[
                pl.BlockSpec((block_cls, ctx_dim), lambda i: (i, 0)),
                pl.BlockSpec(memory_space=pltpu.MemorySpace.VMEM),   # ctx, whole
                pl.BlockSpec((block_cls, suffix_len, ctx_dim), lambda i: (i, 0, 0)),
            ],
            out_specs=pl.BlockSpec((block_cls, seq_len, ctx_dim), lambda i: (i, 0, 0)),
        ),
        compiler_params=pltpu.CompilerParams(
            dimension_semantics=("parallel",),
            vmem_limit_bytes=vmem_limit),
    )


def prompt_assembly_forward(ctx, token_prefix, token_suffix, *, block_cls=None):
    """prompts = cat([prefix, ctx (broadcast over classes), suffix], dim=1)."""
    n_cls = token_prefix.shape[0]
    n_ctx, ctx_dim = ctx.shape
    suffix_len = token_suffix.shape[1]
    dtype = token_suffix.dtype
    ctx = ctx.astype(dtype)                               # one dtype end-to-end
    prefix2d = token_prefix.reshape(n_cls, ctx_dim)       # drop the padded seq=1 dim
    if block_cls is None:
        block_cls = _choose_block_cls(n_cls, n_ctx, suffix_len, ctx_dim, dtype)
    else:
        block_cls = _normalize_block_cls(block_cls, n_cls)
    fn = make_prompt_assembly_call(n_cls, n_ctx, suffix_len, ctx_dim, dtype, block_cls)
    return fn(prefix2d, ctx, token_suffix)


# ---- in-place variant: alias the embedding, write only the ctx rows --------
def _choose_block_cls_inplace(n_cls, n_ctx, ctx_dim, dtype,
                              vmem_budget_bytes=4 * 1024 * 1024):
    itemsize = jnp.dtype(dtype).itemsize
    per_cls = n_ctx * ctx_dim * itemsize
    return int(max(1, min(n_cls, vmem_budget_bytes // max(per_cls, 1))))


def make_prompt_ctx_write_call(n_cls, n_ctx, seq_len, ctx_dim, dtype, block_cls):
    """Aliased assembly: output HBM buffer == embedding buffer; only ctx rows are DMA'd."""
    num_blocks = pl.cdiv(n_cls, block_cls)
    rem = n_cls - (num_blocks - 1) * block_cls            # rows in the last block

    def kernel(ctx_ref, emb_ref, out_ref, buf, sem):
        # ctx_ref : (n_ctx, ctx_dim)               VMEM-resident
        # emb_ref : (n_cls, seq_len, ctx_dim) HBM  (aliased to out_ref; never read here)
        # out_ref : (n_cls, seq_len, ctx_dim) HBM  (== embedding buffer)
        # buf     : (block_cls, n_ctx, ctx_dim)    VMEM scratch
        del emb_ref
        i = pl.program_id(0)
        buf[...] = jnp.broadcast_to(ctx_ref[...][None, :, :], buf.shape)
        start = pl.multiple_of(i * block_cls, block_cls)

        def copy_rows(rows):
            cp = pltpu.make_async_copy(
                buf.at[pl.ds(0, rows)],
                out_ref.at[pl.ds(start, rows), pl.ds(1, n_ctx), :],
                sem)
            cp.start()
            cp.wait()

        if rem == block_cls:
            copy_rows(block_cls)
        else:
            last = pl.num_programs(0) - 1

            @pl.when(i < last)
            def _():
                copy_rows(block_cls)

            @pl.when(i == last)
            def _():
                copy_rows(rem)

    return pl.pallas_call(
        kernel,
        out_shape=jax.ShapeDtypeStruct((n_cls, seq_len, ctx_dim), dtype),
        grid_spec=pltpu.PrefetchScalarGridSpec(
            num_scalar_prefetch=0,
            grid=(num_blocks,),
            in_specs=[
                pl.BlockSpec(memory_space=pltpu.MemorySpace.VMEM),   # ctx (whole)
                pl.BlockSpec(memory_space=pl.ANY),                   # embedding (HBM)
            ],
            out_specs=pl.BlockSpec(memory_space=pl.ANY),             # aliased output (HBM)
            scratch_shapes=[
                pltpu.VMEM((block_cls, n_ctx, ctx_dim), dtype),
                pltpu.SemaphoreType.DMA,
            ],
        ),
        input_output_aliases={1: 0},          # embedding (input 1) aliases output 0
        compiler_params=pltpu.CompilerParams(
            dimension_semantics=("arbitrary",)),
    )


def prompt_assembly_inplace(ctx, embedding, *, block_cls=None):
    """Same result as prompt_assembly_forward, but only the ctx rows touch HBM.

    `embedding` (the token-embedding of the tokenized prompts) is donated/aliased into the
    output; its prefix/suffix rows are left untouched. Do not reuse it after this call.
    """
    n_cls, seq_len, ctx_dim = embedding.shape
    n_ctx = ctx.shape[0]
    dtype = embedding.dtype
    ctx = ctx.astype(dtype)
    if block_cls is None:
        block_cls = _choose_block_cls_inplace(n_cls, n_ctx, ctx_dim, dtype)
    block_cls = int(max(1, min(block_cls, n_cls)))
    fn = make_prompt_ctx_write_call(n_cls, n_ctx, seq_len, ctx_dim, dtype, block_cls)
    return fn(ctx, embedding)


# =============================================================================
# (B) CLIP.forward tail: logits = logit_scale.exp() * normalize(img) @ norm(text).T
# =============================================================================
def make_clip_logits_call(batch, feat_dim, n_cls_p, out_dtype, bm, bn, use_bf16):
    grid = (pl.cdiv(batch, bm), pl.cdiv(n_cls_p, bn))
    mm_dtype = jnp.bfloat16 if use_bf16 else jnp.float32

    def kernel(scale_ref, img_ref, txt_ref, out_ref):
        # scale_ref : (1, 1) f32 SMEM          -- logit_scale.exp()
        # img_ref   : (bm, feat_dim)           -- raw image features
        # txt_ref   : (bn, feat_dim)           -- text features (lane-dense, no transpose)
        # out_ref   : (bm, bn)
        x = img_ref[...].astype(jnp.float32)
        t = txt_ref[...].astype(jnp.float32)
        inv_x = jax.lax.rsqrt(jnp.maximum(jnp.sum(x * x, axis=-1, keepdims=True), 1e-30))
        inv_t = jax.lax.rsqrt(jnp.maximum(jnp.sum(t * t, axis=-1, keepdims=True), 1e-30))
        # Fold the logit scale into the (bm, 1) image inv-norm (VPU work ~bm, not bm*bn).
        xs = (x * (scale_ref[0, 0] * inv_x)).astype(mm_dtype)
        ts = (t * inv_t).astype(mm_dtype)
        logits = jax.lax.dot_general(xs, ts, (((1,), (1,)), ((), ())),
                                     preferred_element_type=jnp.float32)
        out_ref[...] = logits.astype(out_ref.dtype)

    return pl.pallas_call(
        kernel,
        out_shape=jax.ShapeDtypeStruct((batch, n_cls_p), out_dtype),
        grid_spec=pltpu.PrefetchScalarGridSpec(
            num_scalar_prefetch=0,
            grid=grid,
            in_specs=[
                pl.BlockSpec(memory_space=pltpu.MemorySpace.SMEM),      # scale (1,1)
                pl.BlockSpec((bm, feat_dim), lambda i, j: (i, 0)),      # image tile
                pl.BlockSpec((bn, feat_dim), lambda i, j: (j, 0)),      # text tile
            ],
            out_specs=pl.BlockSpec((bm, bn), lambda i, j: (i, j)),
        ),
        compiler_params=pltpu.CompilerParams(
            dimension_semantics=("parallel", "parallel")),
    )


def clip_forward_logits(image_features, text_features, logit_scale, *,
                        class_tile=128, use_bf16_matmul=True):
    """CLIP.forward (post-encoders): normalize image feats, scaled cosine logits.

    TODO(synk): at batch ~8 this is launch/DMA-latency bound; batch more images per call
    or fuse normalize+matmul into the image-encoder tail.
    """
    batch, feat_dim = image_features.shape
    n_cls = text_features.shape[0]
    out_dtype = image_features.dtype

    # Lane-dense class axis: pad to a multiple of 128, slice back after the call.
    n_cls_p = ((n_cls + class_tile - 1) // class_tile) * class_tile
    txt = text_features.astype(out_dtype)
    if n_cls_p != n_cls:
        txt = jnp.pad(txt, ((0, n_cls_p - n_cls), (0, 0)))

    bm = batch if batch <= 256 else 256
    bn = class_tile
    scale = jnp.exp(jnp.asarray(logit_scale, jnp.float32)).reshape(1, 1)

    fn = make_clip_logits_call(batch, feat_dim, n_cls_p, out_dtype, bm, bn,
                               use_bf16_matmul)
    logits = fn(scale, image_features, txt)
    return logits[:, :n_cls] if n_cls_p != n_cls else logits


# =============================================================================
if __name__ == "__main__":
    key = jax.random.PRNGKey(0)

    # ---- (A) prompt assembly --------------------------------------------------
    for n_cls, n_ctx, ctx_dim, seq_len, dtype, forced_block in [
        (48, 8, 128, 16, jnp.float32, None),   # divisible, auto block (single grid step)
        (10, 4, 256, 16, jnp.bfloat16, 8),     # non-divisible tail: grid=2, remainder=2
    ]:
        suffix_len = seq_len - 1 - n_ctx
        key, k_emb, k_ctx = jax.random.split(key, 3)
        # Stand-in for clip_model.token_embedding(tokenized_prompts).
        embedding = jax.random.normal(
            k_emb, (n_cls, seq_len, ctx_dim), dtype=jnp.float32).astype(dtype)
        token_prefix = embedding[:, :1, :]            # SOS embedding
        token_suffix = embedding[:, 1 + n_ctx:, :]    # classname + EOS + pad
        ctx = (0.02 * jax.random.normal(
            k_ctx, (n_ctx, ctx_dim), dtype=jnp.float32)).astype(dtype)

        ref = jnp.concatenate(
            [token_prefix,
             jnp.broadcast_to(ctx[None], (n_cls, n_ctx, ctx_dim)),
             token_suffix], axis=1)

        prompts = jax.block_until_ready(
            prompt_assembly_forward(ctx, token_prefix, token_suffix,
                                    block_cls=forced_block))
        assert prompts.shape == (n_cls, seq_len, ctx_dim)
        assert jnp.array_equal(prompts, ref), "prompt assembly (copy) mismatch"

        # Aliased variant: embedding is donated; only ctx rows are written.
        prompts_ip = jax.block_until_ready(
            prompt_assembly_inplace(ctx, embedding, block_cls=forced_block))
        assert prompts_ip.shape == (n_cls, seq_len, ctx_dim)
        assert jnp.array_equal(prompts_ip, ref), "prompt assembly (alias) mismatch"
        del embedding  # possibly donated; do not reuse

    # ---- (B) CLIP.forward logits ----------------------------------------------
    batch, feat_dim, n_cls = 8, 128, 48
    key, k_img, k_txt = jax.random.split(key, 3)
    image_features = jax.random.normal(k_img, (batch, feat_dim), dtype=jnp.float32)
    text_features = jax.random.normal(k_txt, (n_cls, feat_dim), dtype=jnp.float32)
    text_features = text_features / jnp.linalg.norm(
        text_features, axis=-1, keepdims=True)
    logit_scale = jnp.float32(math.log(1.0 / 0.07))   # CLIP's logit_scale init

    logits = jax.block_until_ready(
        clip_forward_logits(image_features, text_features, logit_scale))

    img_n = image_features / jnp.linalg.norm(image_features, axis=-1, keepdims=True)
    ref_logits = jnp.exp(logit_scale) * (img_n @ text_features.T)
    assert logits.shape == (batch, n_cls)
    assert jnp.allclose(logits, ref_logits, rtol=2e-2, atol=3e-2), "logits mismatch"

    print("KERNEL_OK")
</pallas_src>

<mosaic_0001>
module attributes {stable_mosaic.version = 11 : i64} {
  func.func @kernel(%arg0: i32, %arg1: memref<48x128xf32, #tpu.memory_space<vmem>>, %arg2: memref<8x128xf32, #tpu.memory_space<vmem>>, %arg3: memref<48x7x128xf32, #tpu.memory_space<vmem>>, %arg4: memref<48x16x128xf32, #tpu.memory_space<vmem>>) attributes {dimension_semantics = [#tpu.dimension_semantics<parallel>], iteration_bounds = array<i64: 1>, scalar_prefetch = 0 : i64, scratch_operands = 0 : i64, tpu.core_type = #tpu.core_type<tc>, window_params = [{transform_indices = @transform_0, window_bounds = array<i64: 48, 128>}, {pipeline_mode = #tpu.pipeline_mode<synchronous>, transform_indices = @transform_1, window_bounds = array<i64: 8, 128>}, {transform_indices = @transform_2, window_bounds = array<i64: 48, 7, 128>}, {transform_indices = @transform_3, window_bounds = array<i64: 48, 16, 128>}]} {
    %c0 = arith.constant 0 : index
    %c0_0 = arith.constant 0 : index
    %0 = vector.load %arg1[%c0, %c0_0] : memref<48x128xf32, #tpu.memory_space<vmem>>, vector<48x128xf32>
    %c0_1 = arith.constant 0 : index
    %c0_2 = arith.constant 0 : index
    %c0_3 = arith.constant 0 : index
    %1 = vector.load %arg4[%c0_1, %c0_2, %c0_3] : memref<48x16x128xf32, #tpu.memory_space<vmem>>, vector<48x1x128xf32>
    %2 = vector.shape_cast %1 : vector<48x1x128xf32> to vector<48x128xf32>
    %3 = vector.shape_cast %0 : vector<48x128xf32> to vector<48x1x128xf32>
    tpu.vector_store %arg4[%c0_1, %c0_2, %c0_3], %3 {strides = array<i32>} : memref<48x16x128xf32, #tpu.memory_space<vmem>>, vector<48x1x128xf32>,
    %c0_4 = arith.constant 0 : index
    %c0_5 = arith.constant 0 : index
    %4 = vector.load %arg2[%c0_4, %c0_5] : memref<8x128xf32, #tpu.memory_space<vmem>>, vector<8x128xf32>
    %5 = vector.shape_cast %4 : vector<8x128xf32> to vector<1x8x128xf32>
    %6 = vector.shape_cast %5 : vector<1x8x128xf32> to vector<1x8x128xf32>
    %7 = vector.broadcast %6 : vector<1x8x128xf32> to vector<48x8x128xf32>
    %c0_6 = arith.constant 0 : index
    %c1 = arith.constant 1 : index
    %c0_7 = arith.constant 0 : index
    %8 = vector.load %arg4[%c0_6, %c1, %c0_7] : memref<48x16x128xf32, #tpu.memory_space<vmem>>, vector<48x8x128xf32>
    tpu.vector_store %arg4[%c0_6, %c1, %c0_7], %7 {strides = array<i32>} : memref<48x16x128xf32, #tpu.memory_space<vmem>>, vector<48x8x128xf32>,
    %c0_8 = arith.constant 0 : index
    %c0_9 = arith.constant 0 : index
    %c0_10 = arith.constant 0 : index
    %9 = vector.load %arg3[%c0_8, %c0_9, %c0_10] : memref<48x7x128xf32, #tpu.memory_space<vmem>>, vector<48x7x128xf32>
    %c0_11 = arith.constant 0 : index
    %c9 = arith.constant 9 : index
    %c0_12 = arith.constant 0 : index
    %10 = vector.load %arg4[%c0_11, %c9, %c0_12] : memref<48x16x128xf32, #tpu.memory_space<vmem>>, vector<48x7x128xf32>
    tpu.vector_store %arg4[%c0_11, %c9, %c0_12], %9 {strides = array<i32>} : memref<48x16x128xf32, #tpu.memory_space<vmem>>, vector<48x7x128xf32>,
    return
  }
  func.func @transform_0(%arg0: i32) -> (i32, i32) {
    %c0_i32 = arith.constant 0 : i32
    %c0_i32_0 = arith.constant 0 : i32
    return %arg0, %c0_i32 : i32, i32
  }
  func.func @transform_1(%arg0: i32) -> (i32, i32) {
    %c0_i32 = arith.constant 0 : i32
    %c0_i32_0 = arith.constant 0 : i32
    %c0_i32_1 = arith.constant 0 : i32
    return %c0_i32, %c0_i32_0 : i32, i32
  }
  func.func @transform_2(%arg0: i32) -> (i32, i32, i32) {
    %c0_i32 = arith.constant 0 : i32
    %c0_i32_0 = arith.constant 0 : i32
    %c0_i32_1 = arith.constant 0 : i32
    return %arg0, %c0_i32, %c0_i32_0 : i32, i32, i32
  }
  func.func @transform_3(%arg0: i32) -> (i32, i32, i32) {
    %c0_i32 = arith.constant 0 : i32
    %c0_i32_0 = arith.constant 0 : i32
    %c0_i32_1 = arith.constant 0 : i32
    return %arg0, %c0_i32, %c0_i32_0 : i32, i32, i32
  }
}

</mosaic_0001>

<bundles_post_ra>
// kernel: tpu_custom_call.1
= control target key start
LH: loop header
LB: loop body
LE: loop exit
PB: predicated region body
PF: predicated region fallthrough
CT: control target
= control target key end

     0   :  { %v31_v1 = vlaneseq  ;;  %v630_v4 = vmov 1966171168   ;;  %s943_s0 = inlined_call_operand.vmem [shape: f32[48,128], index: 0, kind: input, shape index: {}]   ;;  %s944_s1 = inlined_call_operand.vmem [shape: f32[8,128], index: 1, kind: input, shape index: {}]   ;;  %s945_s2 = inlined_call_operand.vmem [shape: f32[48,7,128], index: 2, kind: input, shape index: {}]   ;;  %s946_s3 = inlined_call_operand.hbm [shape: f32[48,16,128], index: 3, kind: output, shape index: {}]  }
   0x1   :  { %v657_v0 = vld [vmem:[%s943_s0] sm:$0xff]  ;;  %v662_v2 = vld [vmem:[%s943_s0 + $0x8] sm:$0xff]  ;;  %v667_v3 = vld [vmem:[%s943_s0 + $0x10] sm:$0xff]  ;;  %v669_v5 = vunpack.c.l.s4 %v630_v4 }
   0x2   :  { %v674_v6 = vld [vmem:[%s943_s0 + $0x18] sm:$0xff]  ;;  %v679_v7 = vld [vmem:[%s943_s0 + $0x20] sm:$0xff]  ;;  %v684_v8 = vld [vmem:[%s943_s0 + $0x28] sm:$0xff]  ;;  %v686_v9 = vshrl.u32 %v31_v1, 7  ;;  %v27_v14 = vcombine.high %v657_v0, %v657_v0  ;;  %v76_v15 = vcombine.high %v662_v2, %v662_v2  ;;  %v125_v19 = vcombine.high %v667_v3, %v667_v3 }
   0x3   :  { %v417_v10 = vld [vmem:[%s944_s1] sm:$0xff]  ;;  %v467_v12 = vld [vmem:[%s945_s2 + $0x8] sm:$0x7f]  ;;  %v30_v13 = vunpack.c.0.s8 %v669_v5  ;;  %v468_v16 = vld [vmem:[%s945_s2 + $0x10] sm:$0x7f]  ;;  %v174_v20 = vcombine.high %v674_v6, %v674_v6  ;;  %v223_v28 = vcombine.high %v679_v7, %v679_v7  ;;  %v272_v29 = vcombine.high %v684_v8, %v684_v8 }
   0x4   :  { %v466_v11 = vld [vmem:[%s945_s2] sm:$0x7f]  ;;  %418 = vst [vmem:[#allocation2 + $0x1] sm:$0xff] %v417_v10  ;;  %419 = vst [vmem:[#allocation2 + $0x11] sm:$0xff] %v417_v10  ;;  %v469_v17 = vld [vmem:[%s945_s2 + $0x18] sm:$0x7f] }
   0x5   :  { %420 = vst [vmem:[#allocation2 + $0x21] sm:$0xff] %v417_v10  ;;  %421 = vst [vmem:[#allocation2 + $0x31] sm:$0xff] %v417_v10  ;;  %v470_v18 = vld [vmem:[%s945_s2 + $0x20] sm:$0x7f]  ;;  %v471_v21 = vld [vmem:[%s945_s2 + $0x28] sm:$0x7f]  ;;  %v727_v24 = vsub.s32 %v30_v13, %v686_v9 }
   0x6   :  { %422 = vst [vmem:[#allocation2 + $0x41] sm:$0xff] %v417_v10  ;;  %423 = vst [vmem:[#allocation2 + $0x51] sm:$0xff] %v417_v10  ;;  %v472_v22 = vld [vmem:[%s945_s2 + $0x30] sm:$0x7f]  ;;  %v473_v23 = vld [vmem:[%s945_s2 + $0x38] sm:$0x7f] }
   0x7   :  { %424 = vst [vmem:[#allocation2 + $0x61] sm:$0xff] %v417_v10  ;;  %425 = vst [vmem:[#allocation2 + $0x71] sm:$0xff] %v417_v10  ;;  %v474_v25 = vld [vmem:[%s945_s2 + $0x40] sm:$0x7f]  ;;  %v475_v26 = vld [vmem:[%s945_s2 + $0x48] sm:$0x7f]  ;;  %v34_v33 = vrot.slane %v657_v0, %v727_v24  ;;  %v41_v34 = vrot.slane %v27_v14, %v727_v24  ;;  %v83_v35 = vrot.slane %v662_v2, %v727_v24 }
   0x8   :  { %426 = vst [vmem:[#allocation2 + $0x81] sm:$0xff] %v417_v10  ;;  %427 = vst [vmem:[#allocation2 + $0x91] sm:$0xff] %v417_v10  ;;  %v476_v27 = vld [vmem:[%s945_s2 + $0x50] sm:$0x7f]  ;;  %v477_v30 = vld [vmem:[%s945_s2 + $0x58] sm:$0x7f]  ;;  %v90_v36 = vrot.slane %v76_v15, %v727_v24  ;;  %v774_v40 = vrot.slane %v667_v3, %v727_v24  ;;  %v777_v41 = vrot.slane %v125_v19, %v727_v24 }
   0x9   :  { %428 = vst [vmem:[#allocation2 + $0xa1] sm:$0xff] %v417_v10  ;;  %429 = vst [vmem:[#allocation2 + $0xb1] sm:$0xff] %v417_v10  ;;  %v478_v31 = vld [vmem:[%s945_s2 + $0x60] sm:$0x7f]  ;;  %v479_v32 = vld [vmem:[%s945_s2 + $0x68] sm:$0x7f]  ;;  %v781_v42 = vrot.slane %v674_v6, %v727_v24  ;;  %v784_v43 = vrot.slane %v174_v20, %v727_v24  ;;  %v42_v47 = vcombine.high %v34_v33, %v34_v33 }
   0xa   :  { %430 = vst [vmem:[#allocation2 + $0xc1] sm:$0xff] %v417_v10  ;;  %431 = vst [vmem:[#allocation2 + $0xd1] sm:$0xff] %v417_v10  ;;  %v480_v37 = vld [vmem:[%s945_s2 + $0x70] sm:$0x7f]  ;;  %v481_v38 = vld [vmem:[%s945_s2 + $0x78] sm:$0x7f]  ;;  %v50_v48 = vrot.slane %v34_v33, %v727_v24  ;;  %v43_v49 = vcombine.high %v41_v34, %v41_v34  ;;  %v57_v50 = vrot.slane %v41_v34, %v727_v24 }
   0xb   :  { %432 = vst [vmem:[#allocation2 + $0xe1] sm:$0xff] %v417_v10  ;;  %433 = vst [vmem:[#allocation2 + $0xf1] sm:$0xff] %v417_v10  ;;  %v482_v39 = vld [vmem:[%s945_s2 + $0x80] sm:$0x7f]  ;;  %v483_v44 = vld [vmem:[%s945_s2 + $0x88] sm:$0x7f]  ;;  %v91_v54 = vcombine.high %v83_v35, %v83_v35  ;;  %v99_v55 = vrot.slane %v83_v35, %v727_v24  ;;  %v92_v56 = vcombine.high %v90_v36, %v90_v36 }
   0xc   :  { %434 = vst [vmem:[#allocation2 + $0x101] sm:$0xff] %v417_v10  ;;  %435 = vst [vmem:[#allocation2 + $0x111] sm:$0xff] %v417_v10  ;;  %v484_v45 = vld [vmem:[%s945_s2 + $0x90] sm:$0x7f]  ;;  %v485_v46 = vld [vmem:[%s945_s2 + $0x98] sm:$0x7f]  ;;  %v106_v57 = vrot.slane %v90_v36, %v727_v24  ;;  %v72_v61 = vcombine.high %v50_v48, %v50_v48  ;;  %v64_v62 = vrot.slane %v42_v47, %v727_v24 }
   0xd   :  { %436 = vst [vmem:[#allocation2 + $0x121] sm:$0xff] %v417_v10  ;;  %437 = vst [vmem:[#allocation2 + $0x131] sm:$0xff] %v417_v10  ;;  %v486_v51 = vld [vmem:[%s945_s2 + $0xa0] sm:$0x7f]  ;;  %v487_v52 = vld [vmem:[%s945_s2 + $0xa8] sm:$0x7f]  ;;  %v73_v63 = vcombine.high %v57_v50, %v57_v50  ;;  %v71_v0 = vrot.slane %v43_v49, %v727_v24  ;;  %v121_v4 = vcombine.high %v99_v55, %v99_v55 }
   0xe   :  { %438 = vst [vmem:[#allocation2 + $0x141] sm:$0xff] %v417_v10  ;;  %439 = vst [vmem:[#allocation2 + $0x151] sm:$0xff] %v417_v10  ;;  %v488_v53 = vld [vmem:[%s945_s2 + $0xb0] sm:$0x7f]  ;;  %v489_v58 = vld [vmem:[%s945_s2 + $0xb8] sm:$0x7f]  ;;  %v113_v5 = vrot.slane %v91_v54, %v727_v24  ;;  %v122_v6 = vcombine.high %v106_v57, %v106_v57  ;;  %v120_v9 = vrot.slane %v92_v56, %v727_v24 }
   0xf   :  { %440 = vst [vmem:[#allocation2 + $0x161] sm:$0xff] %v417_v10  ;;  %441 = vst [vmem:[#allocation2 + $0x171] sm:$0xff] %v417_v10  ;;  %v490_v59 = vld [vmem:[%s945_s2 + $0xc0] sm:$0x7f]  ;;  %v491_v60 = vld [vmem:[%s945_s2 + $0xc8] sm:$0x7f]  ;;  %v74_v13 = vcombine.high %v64_v62, %v64_v62  ;;  %v75_v14 = vcombine.high %v71_v0, %v71_v0  ;;  %v140_v15 = vcombine.high %v774_v40, %v774_v40 }
  0x10   :  { %442 = vst [vmem:[#allocation2 + $0x181] sm:$0xff] %v417_v10  ;;  %443 = vst [vmem:[#allocation2 + $0x191] sm:$0xff] %v417_v10  ;;  %v492_v1 = vld [vmem:[%s945_s2 + $0xd0] sm:$0x7f]  ;;  %v493_v2 = vld [vmem:[%s945_s2 + $0xd8] sm:$0x7f]  ;;  %v123_v20 = vcombine.high %v113_v5, %v113_v5 }
  0x11   :  { %444 = vst [vmem:[#allocation2 + $0x1a1] sm:$0xff] %v417_v10  ;;  %445 = vst [vmem:[#allocation2 + $0x1b1] sm:$0xff] %v417_v10  ;;  %v494_v3 = vld [vmem:[%s945_s2 + $0xe0] sm:$0x7f]  ;;  %v500_v19 = vld [vmem:[%s945_s2 + $0x110] sm:$0x7f] }
  0x12   :  { %446 = vst [vmem:[#allocation2 + $0x1c1] sm:$0xff] %v417_v10  ;;  %447 = vst [vmem:[#allocation2 + $0x1d1] sm:$0xff] %v417_v10  ;;  %v510_v48 = vld [vmem:[%s945_s2 + $0x160] sm:$0x7f]  ;;  %v512_v50 = vld [vmem:[%s945_s2 + $0x170] sm:$0x7f] }
  0x13   :  { %448 = vst [vmem:[#allocation2 + $0x1e1] sm:$0xff] %v417_v10  ;;  %449 = vst [vmem:[#allocation2 + $0x1f1] sm:$0xff] %v417_v10  ;;  %v513_v55 = vld [vmem:[%s945_s2 + $0x178] sm:$0x7f] }
  0x14   :  { %450 = vst [vmem:[#allocation2 + $0x201] sm:$0xff] %v417_v10  ;;  %451 = vst [vmem:[#allocation2 + $0x211] sm:$0xff] %v417_v10 }
  0x15   :  { %452 = vst [vmem:[#allocation2 + $0x221] sm:$0xff] %v417_v10  ;;  %453 = vst [vmem:[#allocation2 + $0x231] sm:$0xff] %v417_v10 }
  0x16   :  { %454 = vst [vmem:[#allocation2 + $0x241] sm:$0xff] %v417_v10  ;;  %455 = vst [vmem:[#allocation2 + $0x251] sm:$0xff] %v417_v10 }
  0x17   :  { %456 = vst [vmem:[#allocation2 + $0x261] sm:$0xff] %v417_v10  ;;  %457 = vst [vmem:[#allocation2 + $0x271] sm:$0xff] %v417_v10 }
  0x18   :  { %458 = vst [vmem:[#allocation2 + $0x281] sm:$0xff] %v417_v10  ;;  %459 = vst [vmem:[#allocation2 + $0x291] sm:$0xff] %v417_v10 }
  0x19   :  { %460 = vst [vmem:[#allocation2 + $0x2a1] sm:$0xff] %v417_v10  ;;  %461 = vst [vmem:[#allocation2 + $0x2b1] sm:$0xff] %v417_v10 }
  0x1a   :  { %462 = vst [vmem:[#allocation2 + $0x2c1] sm:$0xff] %v417_v10  ;;  %463 = vst [vmem:[#allocation2 + $0x2d1] sm:$0xff] %v417_v10 }
  0x1b   :  { %464 = vst [vmem:[#allocation2 + $0x2e1] sm:$0xff] %v417_v10  ;;  %465 = vst [vmem:[#allocation2 + $0x2f1] sm:$0xff] %v417_v10  ;;  %v495_v10 = vld [vmem:[%s945_s2 + $0xe8] sm:$0x7f] }
  0x1c   :  { %514 = vst [vmem:[#allocation2 + $0x9] sm:$0x7f] %v466_v11  ;;  %515 = vst [vmem:[#allocation2 + $0x19] sm:$0x7f] %v467_v12  ;;  %v496_v11 = vld [vmem:[%s945_s2 + $0xf0] sm:$0x7f] }
  0x1d   :  { %516 = vst [vmem:[#allocation2 + $0x29] sm:$0x7f] %v468_v16  ;;  %517 = vst [vmem:[#allocation2 + $0x39] sm:$0x7f] %v469_v17  ;;  %v497_v12 = vld [vmem:[%s945_s2 + $0xf8] sm:$0x7f]  ;;  %v148_v16 = vrot.slane %v774_v40, %v727_v24 }
  0x1e   :  { %518 = vst [vmem:[#allocation2 + $0x49] sm:$0x7f] %v470_v18  ;;  %519 = vst [vmem:[#allocation2 + $0x59] sm:$0x7f] %v471_v21  ;;  %v498_v17 = vld [vmem:[%s945_s2 + $0x100] sm:$0x7f]  ;;  %v124_v21 = vcombine.high %v120_v9, %v120_v9 }
  0x1f   :  { %520 = vst [vmem:[#allocation2 + $0x69] sm:$0x7f] %v472_v22  ;;  %521 = vst [vmem:[#allocation2 + $0x79] sm:$0x7f] %v473_v23  ;;  %v499_v18 = vld [vmem:[%s945_s2 + $0x108] sm:$0x7f]  ;;  %v141_v22 = vcombine.high %v777_v41, %v777_v41  ;;  %v155_v23 = vrot.slane %v777_v41, %v727_v24 }
  0x20   :  { %522 = vst [vmem:[#allocation2 + $0x89] sm:$0x7f] %v474_v25  ;;  %523 = vst [vmem:[#allocation2 + $0x99] sm:$0x7f] %v475_v26  ;;  %v501_v25 = vld [vmem:[%s945_s2 + $0x118] sm:$0x7f] }
  0x21   :  { %524 = vst [vmem:[#allocation2 + $0xa9] sm:$0x7f] %v476_v27  ;;  %525 = vst [vmem:[#allocation2 + $0xb9] sm:$0x7f] %v477_v30  ;;  %v502_v26 = vld [vmem:[%s945_s2 + $0x120] sm:$0x7f]  ;;  %v170_v30 = vcombine.high %v148_v16, %v148_v16 }
  0x22   :  { %526 = vst [vmem:[#allocation2 + $0xc9] sm:$0x7f] %v478_v31  ;;  %527 = vst [vmem:[#allocation2 + $0xd9] sm:$0x7f] %v479_v32  ;;  %v503_v27 = vld [vmem:[%s945_s2 + $0x128] sm:$0x7f]  ;;  %v162_v31 = vrot.slane %v140_v15, %v727_v24  ;;  %v189_v32 = vcombine.high %v781_v42, %v781_v42 }
  0x23   :  { %528 = vst [vmem:[#allocation2 + $0xe9] sm:$0x7f] %v480_v37  ;;  %529 = vst [vmem:[#allocation2 + $0xf9] sm:$0x7f] %v481_v38  ;;  %v171_v37 = vcombine.high %v155_v23, %v155_v23  ;;  %v169_v38 = vrot.slane %v141_v22, %v727_v24 }
  0x24   :  { %530 = vst [vmem:[#allocation2 + $0x109] sm:$0x7f] %v482_v39  ;;  %578 = vst.sshfl [vmem:[#allocation2] sm:$0x1 pattern:$0x73625140] %v34_v33  ;;  %v197_v33 = vrot.slane %v781_v42, %v727_v24  ;;  %v190_v39 = vcombine.high %v784_v43, %v784_v43 }
  0x25   :  { %580 = vst.sshfl [vmem:[#allocation2 + $0x40] sm:$0x1 pattern:$0x73625140] %v41_v34  ;;  %531 = vst [vmem:[#allocation2 + $0x119] sm:$0x7f] %v483_v44 }
  0x26   :  { %582 = vst.sshfl [vmem:[#allocation2 + $0x80] sm:$0x1 pattern:$0x73625140] %v83_v35  ;;  %532 = vst [vmem:[#allocation2 + $0x129] sm:$0x7f] %v484_v45  ;;  %v172_v45 = vcombine.high %v162_v31, %v162_v31 }
  0x27   :  { %584 = vst.sshfl [vmem:[#allocation2 + $0xc0] sm:$0x1 pattern:$0x73625140] %v90_v36  ;;  %533 = vst [vmem:[#allocation2 + $0x139] sm:$0x7f] %v485_v46  ;;  %v219_v46 = vcombine.high %v197_v33, %v197_v33 }
  0x28   :  { %586 = vst.sshfl [vmem:[#allocation2 + $0x100] sm:$0x1 pattern:$0x73625140] %v774_v40  ;;  %534 = vst [vmem:[#allocation2 + $0x149] sm:$0x7f] %v486_v51  ;;  %v204_v40 = vrot.slane %v784_v43, %v727_v24  ;;  %v173_v51 = vcombine.high %v169_v38, %v169_v38 }
  0x29   :  { %588 = vst.sshfl [vmem:[#allocation2 + $0x140] sm:$0x1 pattern:$0x73625140] %v777_v41  ;;  %535 = vst [vmem:[#allocation2 + $0x159] sm:$0x7f] %v487_v52 }
  0x2a   :  { %590 = vst.sshfl [vmem:[#allocation2 + $0x180] sm:$0x1 pattern:$0x73625140] %v781_v42  ;;  %536 = vst [vmem:[#allocation2 + $0x169] sm:$0x7f] %v488_v53  ;;  %v220_v52 = vcombine.high %v204_v40, %v204_v40  ;;  %v218_v53 = vrot.slane %v190_v39, %v727_v24 }
  0x2b   :  { %592 = vst.sshfl [vmem:[#allocation2 + $0x1c0] sm:$0x1 pattern:$0x73625140] %v784_v43  ;;  %537 = vst [vmem:[#allocation2 + $0x179] sm:$0x7f] %v489_v58  ;;  %v211_v43 = vrot.slane %v189_v32, %v727_v24 }
  0x2c   :  { %579 = vst.sshfl [vmem:[#allocation2 + $0x10] sm:$0x1 pattern:$0x73625140] %v42_v47  ;;  %538 = vst [vmem:[#allocation2 + $0x189] sm:$0x7f] %v490_v59  ;;  %v230_v47 = vrot.slane %v679_v7, %v727_v24 }
  0x2d   :  { %581 = vst.sshfl [vmem:[#allocation2 + $0x50] sm:$0x1 pattern:$0x73625140] %v43_v49  ;;  %539 = vst [vmem:[#allocation2 + $0x199] sm:$0x7f] %v491_v60 }
  0x2e   :  { %583 = vst.sshfl [vmem:[#allocation2 + $0x90] sm:$0x1 pattern:$0x73625140] %v91_v54  ;;  %540 = vst [vmem:[#allocation2 + $0x1a9] sm:$0x7f] %v492_v1  ;;  %v237_v54 = vrot.slane %v223_v28, %v727_v24 }
  0x2f   :  { %585 = vst.sshfl [vmem:[#allocation2 + $0xd0] sm:$0x1 pattern:$0x73625140] %v92_v56  ;;  %541 = vst [vmem:[#allocation2 + $0x1b9] sm:$0x7f] %v493_v2 }
  0x30   :  { %542 = vst [vmem:[#allocation2 + $0x1c9] sm:$0x7f] %v494_v3  ;;  %371 = vst [vmem:[#allocation2 + $0x20] sm:$0x1] %v72_v61  ;;  %v504_v34 = vld [vmem:[%s945_s2 + $0x130] sm:$0x7f] }
  0x31   :  { %375 = vst [vmem:[#allocation2 + $0x60] sm:$0x1] %v73_v63  ;;  %543 = vst [vmem:[#allocation2 + $0x1d9] sm:$0x7f] %v495_v10  ;;  %v505_v35 = vld [vmem:[%s945_s2 + $0x138] sm:$0x7f] }
  0x32   :  { %544 = vst [vmem:[#allocation2 + $0x1e9] sm:$0x7f] %v496_v11  ;;  %545 = vst [vmem:[#allocation2 + $0x1f9] sm:$0x7f] %v497_v12  ;;  %v506_v36 = vld [vmem:[%s945_s2 + $0x140] sm:$0x7f] }
  0x33   :  { %379 = vst [vmem:[#allocation2 + $0xa0] sm:$0x1] %v121_v4  ;;  %383 = vst [vmem:[#allocation2 + $0xe0] sm:$0x1] %v122_v6  ;;  %v507_v41 = vld [vmem:[%s945_s2 + $0x148] sm:$0x7f] }
  0x34   :  { %546 = vst [vmem:[#allocation2 + $0x209] sm:$0x7f] %v498_v17  ;;  %547 = vst [vmem:[#allocation2 + $0x219] sm:$0x7f] %v499_v18  ;;  %v508_v42 = vld [vmem:[%s945_s2 + $0x150] sm:$0x7f] }
  0x35   :  { %548 = vst [vmem:[#allocation2 + $0x229] sm:$0x7f] %v500_v19  ;;  %372 = vst [vmem:[#allocation2 + $0x30] sm:$0x1] %v74_v13  ;;  %v509_v44 = vld [vmem:[%s945_s2 + $0x158] sm:$0x7f] }
  0x36   :  { %376 = vst [vmem:[#allocation2 + $0x70] sm:$0x1] %v75_v14  ;;  %587 = vst.sshfl [vmem:[#allocation2 + $0x110] sm:$0x1 pattern:$0x73625140] %v140_v15 }
  0x37   :  { %549 = vst [vmem:[#allocation2 + $0x239] sm:$0x7f] %v501_v25  ;;  %550 = vst [vmem:[#allocation2 + $0x249] sm:$0x7f] %v502_v26  ;;  %v511_v49 = vld [vmem:[%s945_s2 + $0x168] sm:$0x7f] }
  0x38   :  { %551 = vst [vmem:[#allocation2 + $0x259] sm:$0x7f] %v503_v27  ;;  %380 = vst [vmem:[#allocation2 + $0xb0] sm:$0x1] %v123_v20 }
  0x39   :  { %384 = vst [vmem:[#allocation2 + $0xf0] sm:$0x1] %v124_v21  ;;  %589 = vst.sshfl [vmem:[#allocation2 + $0x150] sm:$0x1 pattern:$0x73625140] %v141_v22 }
  0x3a   :  { %552 = vst [vmem:[#allocation2 + $0x269] sm:$0x7f] %v504_v34  ;;  %553 = vst [vmem:[#allocation2 + $0x279] sm:$0x7f] %v505_v35 }
  0x3b   :  { %554 = vst [vmem:[#allocation2 + $0x289] sm:$0x7f] %v506_v36  ;;  %387 = vst [vmem:[#allocation2 + $0x120] sm:$0x1] %v170_v30 }
  0x3c   :  { %591 = vst.sshfl [vmem:[#allocation2 + $0x190] sm:$0x1 pattern:$0x73625140] %v189_v32  ;;  %555 = vst [vmem:[#allocation2 + $0x299] sm:$0x7f] %v507_v41 }
  0x3d   :  { %556 = vst [vmem:[#allocation2 + $0x2a9] sm:$0x7f] %v508_v42  ;;  %557 = vst [vmem:[#allocation2 + $0x2b9] sm:$0x7f] %v509_v44 }
  0x3e   :  { %391 = vst [vmem:[#allocation2 + $0x160] sm:$0x1] %v171_v37  ;;  %593 = vst.sshfl [vmem:[#allocation2 + $0x1d0] sm:$0x1 pattern:$0x73625140] %v190_v39 }
  0x3f   :  { %558 = vst [vmem:[#allocation2 + $0x2c9] sm:$0x7f] %v510_v48  ;;  %559 = vst [vmem:[#allocation2 + $0x2d9] sm:$0x7f] %v511_v49 }
  0x40   :  { %560 = vst [vmem:[#allocation2 + $0x2e9] sm:$0x7f] %v512_v50 }
  0x41   :  { %8 = vsyncpa [#allocation3], 0  ;;  %388 = vst [vmem:[#allocation2 + $0x130] sm:$0x1] %v172_v45  ;;  %v221_v56 = vcombine.high %v211_v43, %v211_v43  ;;  %v238_v57 = vcombine.high %v230_v47, %v230_v47  ;;  %v246_v58 = vrot.slane %v230_v47, %v727_v24  ;;  %v279_v59 = vrot.slane %v684_v8, %v727_v24  ;;  %s631_s2 = smov [#allocation2]  }
  0x42   :  { %395 = vst [vmem:[#allocation2 + $0x1a0] sm:$0x1] %v219_v46  ;;  %594 = vst.sshfl [vmem:[#allocation2 + $0x200] sm:$0x1 pattern:$0x73625140] %v230_v47  ;;  %v222_v7 = vcombine.high %v218_v53, %v218_v53  ;;  %v239_v28 = vcombine.high %v237_v54, %v237_v54  ;;  %v253_v60 = vrot.slane %v237_v54, %v727_v24 }
  0x43   :  { %561 = vst [vmem:[#allocation2 + $0x2f9] sm:$0x7f] %v513_v55  ;;  %392 = vst [vmem:[#allocation2 + $0x170] sm:$0x1] %v173_v51  ;;  %v286_v61 = vrot.slane %v272_v29, %v727_v24  ;;  %v268_v62 = vcombine.high %v246_v58, %v246_v58  ;;  %v260_v63 = vrot.slane %v238_v57, %v727_v24  ;;  %s567_s6 = sshll.u32 %s631_s2, 4  ;;  %s568_s6 = int_to_ptr.vmem [resolvable:$true] %s567_s6 }
  0x44   :  { %399 = vst [vmem:[#allocation2 + $0x1e0] sm:$0x1] %v220_v52  ;;  %596 = vst.sshfl [vmem:[#allocation2 + $0x240] sm:$0x1 pattern:$0x73625140] %v237_v54  ;;  %v287_v0 = vcombine.high %v279_v59, %v279_v59  ;;  %v295_v1 = vrot.slane %v279_v59, %v727_v24  ;;  %v269_v2 = vcombine.high %v253_v60, %v253_v60  ;;  %p611_p1 = scmp.lt.s32.totalorder %s568_s6, %s568_s6 }
  0x45   :  { %396 = vst [vmem:[#allocation2 + $0x1b0] sm:$0x1] %v221_v56  ;;  %595 = vst.sshfl [vmem:[#allocation2 + $0x210] sm:$0x1 pattern:$0x73625140] %v238_v57  ;;  %v267_v3 = vrot.slane %v239_v28, %v727_v24  ;;  %v288_v4 = vcombine.high %v286_v61, %v286_v61  ;;  %v302_v5 = vrot.slane %v286_v61, %v727_v24 }
  0x46   :  { %598 = vst.sshfl [vmem:[#allocation2 + $0x280] sm:$0x1 pattern:$0x73625140] %v279_v59  ;;  %400 = vst [vmem:[#allocation2 + $0x1f0] sm:$0x1] %v222_v7  ;;  %v270_v8 = vcombine.high %v260_v63, %v260_v63  ;;  %v317_v29 = vcombine.high %v295_v1, %v295_v1  ;;  %v309_v6 = vrot.slane %v287_v0, %v727_v24 }
  0x47   :  { %597 = vst.sshfl [vmem:[#allocation2 + $0x250] sm:$0x1 pattern:$0x73625140] %v239_v28  ;;  %403 = vst [vmem:[#allocation2 + $0x220] sm:$0x1] %v268_v62  ;;  %v271_v9 = vcombine.high %v267_v3, %v267_v3  ;;  %v318_v10 = vcombine.high %v302_v5, %v302_v5  ;;  %v316_v11 = vrot.slane %v288_v4, %v727_v24 }
  0x48   :  { %600 = vst.sshfl [vmem:[#allocation2 + $0x2c0] sm:$0x1 pattern:$0x73625140] %v286_v61  ;;  %407 = vst [vmem:[#allocation2 + $0x260] sm:$0x1] %v269_v2  ;;  %v319_v12 = vcombine.high %v309_v6, %v309_v6 }
  0x49   :  { %599 = vst.sshfl [vmem:[#allocation2 + $0x290] sm:$0x1 pattern:$0x73625140] %v287_v0  ;;  %404 = vst [vmem:[#allocation2 + $0x230] sm:$0x1] %v270_v8  ;;  %v320_v13 = vcombine.high %v316_v11, %v316_v11 }
  0x4a   :  { %601 = vst.sshfl [vmem:[#allocation2 + $0x2d0] sm:$0x1 pattern:$0x73625140] %v288_v4  ;;  %411 = vst [vmem:[#allocation2 + $0x2a0] sm:$0x1] %v317_v29 }
  0x4b   :  { %408 = vst [vmem:[#allocation2 + $0x270] sm:$0x1] %v271_v9  ;;  %415 = vst [vmem:[#allocation2 + $0x2e0] sm:$0x1] %v318_v10  ;;  %s606_s7 = scalar_lea.vmem %s568_s6, 12288 }
  0x4c   :  { %412 = vst [vmem:[#allocation2 + $0x2b0] sm:$0x1] %v319_v12  ;;  %416 = vst [vmem:[#allocation2 + $0x2f0] sm:$0x1] %v320_v13  ;;  %p607_p0 = scmp.ne.s32.totalorder %s568_s6, %s606_s7  ;;  %p612_p2 = scmp.lt.s32.totalorder %s606_s7, %s606_s7 }
  0x4e   :  { %p613_p3 = por %p612_p2, %p611_p1 }
  0x50   :  { %p614_p4 = pnand %p613_p3, %p607_p0 }
  0x52   :  { %617 = shalt.err (!%p614_p4)
}
  0x53   :  { %s618_s10 = scalar_lea.hbm %s946_s3, 12288 }
  0x54   :  { %p619_p5 = scmp.ne.s32.totalorder %s946_s3, %s618_s10  ;;  %p622_p6 = scmp.lt.u32.totalorder %s618_s10, %s946_s3 }
  0x56   :  { %p624_p7 = pnand %p622_p6, %p619_p5 }
  0x58   :  { %627 = shalt.err (!%p624_p7)
}
  0x59   :  { %s632_s15 = smov 128   ;;  %s633_s16 = smov 8  }
  0x5a   :  { %573 = dma.vmem_to_hbm [thread:$0]  %s568_s6, 12288, %s946_s3, [#allocation3], %s632_s15, %s632_s15, %s633_s16  }
  0x5b   :  { %628 = dma.done.wait [#allocation3], 12288  }
  0x5c   :  { %629 = vsyncadd [#allocation3], 4294955008 }
  0x5d   :  { %577 = vsyncpa [#allocation3], 1 }

</bundles_post_ra>
